<compile_context>
chip_gen: v7x
topology: tpu7x:2x2x1
jax: 0.10.0
libtpu: 0.0.40
codegen_flags: <defaults>
</compile_context>

<pallas_src>
import functools

import numpy as np
import jax
import jax.numpy as jnp
from jax.experimental import pallas as pl
from jax.experimental.pallas import tpu as pltpu


# ---------------------------------------------------------------------------
# Deterministic parameter construction (matches EDO.__init__ with init='95').
# Unused by forward(), kept only for fidelity with the PyTorch module.
# ---------------------------------------------------------------------------
def make_edo_params_95():
    A = jnp.array(
        [[[0.0, 0.0, 0.0, 0.0],
          [-1.0, 0.0, 0.0, 0.0],
          [0.0, 0.0, 0.0, 0.0],
          [0.0, 1.0, 0.0, 0.0]]],
        dtype=jnp.float32,
    )
    b = jnp.array([[0.0, 0.0, -1.0, 0.0]], dtype=jnp.float32)
    c = jnp.array([8.0], dtype=jnp.float32)
    window = (-2, -1, 0, 1)
    return A, b, c, window


# ---------------------------------------------------------------------------
# Pallas kernel: single elementwise scale (strength-reduced RK4^N).
# ---------------------------------------------------------------------------
def _edo_scale_kernel(x_ref, o_ref, *, factor):
    # `factor` is a Python float baked in as a constant; weak-typed multiply
    # keeps the array dtype (f32 stays f32, bf16 stays bf16).
    o_ref[...] = x_ref[...] * factor


# ---------------------------------------------------------------------------
# Tiling heuristics.
# ---------------------------------------------------------------------------
_MAX_TILE_BYTES = 4 << 20     # ~4 MiB blocks: near HBM roofline, few grid steps
_SMALL_BYTES = 256 * 1024     # below this, one grid program (overhead-bound)


def _sublane_multiple(dtype):
    # Native sublane packing: 8 rows for 32-bit, 16 for 16-bit, 32 for 8-bit.
    return max(8, 32 // jnp.dtype(dtype).itemsize)


def _num_tensorcores():
    # v7x has 2 TensorCores per chip; v5e/v6e have 1 (grid is a serial loop).
    try:
        kind = jax.devices()[0].device_kind.lower()
        if "v7" in kind:
            return 2
    except Exception:
        pass
    return 1


def _lane_dense_view(B, D):
    """Pick a lane-dense 2D view (rows, W) of the contiguous (B, D) array,
    with W a multiple of 128, when possible (pure layout plumbing)."""
    total = B * D
    if D >= 128 and D % 128 == 0:
        return B, D
    for W in (4096, 2048, 1024, 512, 256, 128):
        if total % W == 0:
            return total // W, W
    # Fall back to the original shape: still correct, just masked stores.
    return B, D


def _choose_tile_rows(R, W, dtype, *, min_programs):
    """Largest row tile (multiple of the sublane packing) that fits the VMEM
    budget; shrunk only as needed to give >= min_programs grid programs."""
    sub = _sublane_multiple(dtype)
    itemsize = jnp.dtype(dtype).itemsize
    row_bytes = max(1, W * itemsize)
    cap = max(sub, (_MAX_TILE_BYTES // row_bytes) // sub * sub)
    tile = min(cap, pl.cdiv(R, sub) * sub)
    while min_programs > 1 and tile > sub and pl.cdiv(R, tile) < min_programs:
        tile = max(sub, ((tile // 2) // sub) * sub)
    return tile


def _build_edo_call(R, W, dtype, *, factor, tile_rows):
    grid = (pl.cdiv(R, tile_rows),)
    tile_bytes = tile_rows * W * jnp.dtype(dtype).itemsize
    # Both BlockSpecs double-buffer (aliasing saves HBM, not VMEM):
    # 2 specs x 2 buffers x tile = 4x tile; budget 6x for headroom.
    vmem_limit = int(max(8 << 20, 6 * tile_bytes))

    kernel = functools.partial(_edo_scale_kernel, factor=factor)
    return pl.pallas_call(
        kernel,
        out_shape=jax.ShapeDtypeStruct((R, W), dtype),
        grid_spec=pltpu.PrefetchScalarGridSpec(
            num_scalar_prefetch=0,
            grid=grid,
            in_specs=[pl.BlockSpec((tile_rows, W), lambda i: (i, 0))],
            out_specs=pl.BlockSpec((tile_rows, W), lambda i: (i, 0)),
        ),
        input_output_aliases={0: 0},  # x fully overwritten -> reuse its buffer
        compiler_params=pltpu.CompilerParams(
            dimension_semantics=("parallel",),
            vmem_limit_bytes=vmem_limit,
        ),
    )


@functools.partial(jax.jit, static_argnames=("N", "dt"), donate_argnums=(0,))
def edo_forward(x, *, N, dt):
    """Applies N RK4 steps of the (identity) EDO to x of shape (B, x_dim)."""
    assert jnp.issubdtype(x.dtype, jnp.floating), "EDO forward needs a float dtype"
    B, D = x.shape
    dt = float(dt)

    # Exact algebraic collapse of N RK4 steps of x' = x, computed in float64.
    per_step = 1.0 + dt + dt * dt / 2.0 + dt ** 3 / 6.0 + dt ** 4 / 24.0
    factor = float(per_step ** N)
    assert np.isfinite(factor), "per_step**N overflowed float64; reduce N*dt"

    # Lane-dense 2D view of the contiguous array (W multiple of 128 if possible).
    R, W = _lane_dense_view(B, D)

    total_bytes = B * D * jnp.dtype(x.dtype).itemsize
    # Tiny inputs: one grid program (launch/grid-step overhead dominates).
    min_programs = 1 if total_bytes < _SMALL_BYTES else _num_tensorcores()
    tile_rows = _choose_tile_rows(R, W, x.dtype, min_programs=min_programs)

    xv = x.reshape(R, W)
    out = _build_edo_call(R, W, x.dtype, factor=factor, tile_rows=tile_rows)(xv)
    return out.reshape(B, D)


# ---------------------------------------------------------------------------
# Pure-JAX reference (mirrors the PyTorch forward literally, step by step).
# ---------------------------------------------------------------------------
def edo_forward_ref(x, *, N, dt):
    for _ in range(N):
        k1 = x
        k2 = x + 0.5 * dt * k1
        k3 = x + 0.5 * dt * k2
        k4 = x + dt * k3
        x = x + dt / 6.0 * (k1 + 2.0 * k2 + 2.0 * k3 + k4)
    return x


if __name__ == "__main__":
    # Module config (small, consistent with Lorenz-95 usage).
    x_dim = 128     # state dimension -> lane axis
    N = 4           # RK4 steps
    dt = 0.05

    # Parameters of the module (unused in forward, exactly as in PyTorch).
    A, b, c, window = make_edo_params_95()

    # Deterministic input: batch of 16 states of dimension x_dim.
    key = jax.random.PRNGKey(0)
    x = jax.random.normal(key, (16, x_dim), dtype=jnp.float32)

    # Reference first (x is donated to the kernel call and becomes invalid).
    ref = jax.block_until_ready(edo_forward_ref(x, N=N, dt=dt))

    out = edo_forward(x, N=N, dt=dt)
    out = jax.block_until_ready(out)

    # Strength reduction reassociates the FP ops, so allow a few-ULP slack
    # relative to the literal per-step float32 reference.
    np.testing.assert_allclose(np.asarray(out), np.asarray(ref),
                               rtol=1e-5, atol=1e-6)

    print("KERNEL_OK")
</pallas_src>

<mosaic_0001>
module attributes {stable_mosaic.version = 11 : i64} {
  func.func @_edo_scale_kernel(%arg0: i32, %arg1: memref<16x128xf32, #tpu.memory_space<vmem>>, %arg2: memref<16x128xf32, #tpu.memory_space<vmem>>) attributes {dimension_semantics = [#tpu.dimension_semantics<parallel>], iteration_bounds = array<i64: 1>, scalar_prefetch = 0 : i64, scratch_operands = 0 : i64, tpu.core_type = #tpu.core_type<tc>, window_params = [{transform_indices = @transform_0, window_bounds = array<i64: 16, 128>}, {transform_indices = @transform_1, window_bounds = array<i64: 16, 128>}]} {
    %c0 = arith.constant 0 : index
    %c0_0 = arith.constant 0 : index
    %0 = vector.load %arg1[%c0, %c0_0] : memref<16x128xf32, #tpu.memory_space<vmem>>, vector<16x128xf32>
    %cst = arith.constant 1.22140276 : f32
    %1 = vector.broadcast %cst : f32 to vector<16x128xf32>
    %2 = arith.mulf %0, %1 : vector<16x128xf32>
    %c0_1 = arith.constant 0 : index
    %c0_2 = arith.constant 0 : index
    %3 = vector.load %arg2[%c0_1, %c0_2] : memref<16x128xf32, #tpu.memory_space<vmem>>, vector<16x128xf32>
    tpu.vector_store %arg2[%c0_1, %c0_2], %2 {strides = array<i32>} : memref<16x128xf32, #tpu.memory_space<vmem>>, vector<16x128xf32>,
    return
  }
  func.func @transform_0(%arg0: i32) -> (i32, i32) {
    %c0_i32 = arith.constant 0 : i32
    %c0_i32_0 = arith.constant 0 : i32
    return %arg0, %c0_i32 : i32, i32
  }
  func.func @transform_1(%arg0: i32) -> (i32, i32) {
    %c0_i32 = arith.constant 0 : i32
    %c0_i32_0 = arith.constant 0 : i32
    return %arg0, %c0_i32 : i32, i32
  }
}

</mosaic_0001>

<bundles_post_ra>
// kernel: edo_forward.1
= control target key start
LH: loop header
LB: loop body
LE: loop exit
PB: predicated region body
PF: predicated region fallthrough
CT: control target
= control target key end

     0   :  { %6 = vsyncpa [#allocation3], 0  ;;  %s136_s0 = inlined_call_operand.hbm [shape: f32[16,128], index: 0, kind: input, shape index: {}, may-alias: {0,1}]   ;;  %s137_s1 = inlined_call_operand.hbm [shape: f32[16,128], index: 1, kind: output, shape index: {}, may-alias: {0,1}]  }
   0x1   :  { %7 = vsyncpa [#allocation4], 0  ;;  %s98_s6 = smov [#allocation2]   ;;  %s50_s10 = scalar_lea.hbm %s136_s0, 256 }
   0x2   :  { %s13_s7 = sshll.u32 %s98_s6, 4  ;;  %p51_p0 = scmp.ne.s32.totalorder %s136_s0, %s50_s10  ;;  %s14_s7 = int_to_ptr.vmem [resolvable:$true] %s13_s7 }
   0x3   :  { %p54_p1 = scmp.lt.u32.totalorder %s50_s10, %s136_s0 }
   0x5   :  { %p56_p2 = pnand %p54_p1, %p51_p0 }
   0x7   :  { %59 = shalt.err (!%p56_p2)
}
   0x8   :  { %s60_s15 = scalar_lea.vmem %s14_s7, 256  ;;  %p65_p4 = scmp.lt.s32.totalorder %s14_s7, %s14_s7 }
   0x9   :  { %p61_p3 = scmp.ne.s32.totalorder %s14_s7, %s60_s15  ;;  %p66_p5 = scmp.lt.s32.totalorder %s60_s15, %s60_s15 }
   0xb   :  { %p67_p6 = por %p66_p5, %p65_p4 }
   0xd   :  { %p68_p7 = pnand %p67_p6, %p61_p3 }
   0xf   :  { %71 = shalt.err (!%p68_p7)
}
  0x10   :  { %s99_s16 = smov 128   ;;  %s100_s17 = smov 8  }
  0x11   :  { %19 = dma.hbm_to_vmem [thread:$0]  %s136_s0, 256, %s14_s7, [#allocation3], %s99_s16, %s99_s16, %s100_s17  }
  0x12   :  { %94 = dma.done.wait [#allocation3], 256  }
  0x13   :  { %95 = vsyncadd [#allocation3], 4294967040  ;;  %s101_s20 = smov [#allocation5]   ;;  %v23_v0 = vld [vmem:[#allocation2] sm:$0xff]  ;;  %v24_v1 = vld [vmem:[#allocation2 + $0x8] sm:$0xff] }
  0x14   :  { %s34_s21 = sshll.u32 %s101_s20, 4  ;;  %v25_v2 = vmul.f32 1.2214028, %v23_v0  ;;  %v26_v3 = vmul.f32 1.2214028, %v24_v1  ;;  %s35_s21 = int_to_ptr.vmem [resolvable:$true] %s34_s21 }
  0x15   :  { %s72_s22 = scalar_lea.vmem %s35_s21, 256  ;;  %p77_p9 = scmp.lt.s32.totalorder %s35_s21, %s35_s21 }
  0x16   :  { %27 = vst [vmem:[#allocation5] sm:$0xff] %v25_v2  ;;  %28 = vst [vmem:[#allocation5 + $0x8] sm:$0xff] %v26_v3  ;;  %p73_p8 = scmp.ne.s32.totalorder %s35_s21, %s72_s22  ;;  %p78_p10 = scmp.lt.s32.totalorder %s72_s22, %s72_s22 }
  0x18   :  { %p79_p11 = por %p78_p10, %p77_p9 }
  0x1a   :  { %p80_p12 = pnand %p79_p11, %p73_p8 }
  0x1c   :  { %83 = shalt.err (!%p80_p12)
}
  0x1d   :  { %s84_s24 = scalar_lea.hbm %s137_s1, 256 }
  0x1e   :  { %p85_p13 = scmp.ne.s32.totalorder %s137_s1, %s84_s24  ;;  %p88_p0 = scmp.lt.u32.totalorder %s84_s24, %s137_s1 }
  0x20   :  { %p90_p1 = pnand %p88_p0, %p85_p13 }
  0x22   :  { %93 = shalt.err (!%p90_p1)
}
  0x23   :  { %40 = dma.vmem_to_hbm [thread:$0]  %s35_s21, 256, %s137_s1, [#allocation4], %s99_s16, %s99_s16, %s100_s17  }
  0x24   :  { %96 = dma.done.wait [#allocation4], 256  }
  0x25   :  { %97 = vsyncadd [#allocation4], 4294967040 }
  0x26   :  { %44 = vsyncpa [#allocation3], 1 }
  0x27   :  { %45 = vsyncpa [#allocation4], 1 }

</bundles_post_ra>
